<compile_context>
chip_gen: v7x
topology: tpu7x:2x2x1
jax: 0.10.0
libtpu: 0.0.40
codegen_flags: <defaults>
</compile_context>

<pallas_src>
import math

import jax
import jax.numpy as jnp
from jax.experimental import pallas as pl
from jax.experimental.pallas import tpu as pltpu


def _fused_kernel(x_ref, w_ref, b_ref, p0_ref, p1_ref, o_ref):
    # x_ref : (1, 2, ROWS, 128) VMEM, channels-first input tile.
    # w_ref : (2, 2) SMEM  (PyTorch Linear weight, [out, in]).
    # b_ref : (2,)  SMEM.
    # p0/p1 : (128, 256) VMEM one-hot lane-interleave matrices (constant).
    # o_ref : (1, ROWS, 256) VMEM  -> row-major (B, S, 2) output.
    x0 = x_ref[0, 0]                    # (ROWS, 128) channel 0, dense slab
    x1 = x_ref[0, 1]                    # (ROWS, 128) channel 1, dense slab

    w00 = w_ref[0, 0]
    w01 = w_ref[0, 1]
    w10 = w_ref[1, 0]
    w11 = w_ref[1, 1]
    b0 = b_ref[0]
    b1 = b_ref[1]

    # v2 = x @ W^T + b as VPU FMAs (K = N = 2 -> MXU would be pure overhead).
    y0 = x0 * w00 + x1 * w01 + b0
    y1 = x0 * w10 + x1 * w11 + b1

    # v3 = sigmoid(v2); v4 = dropout(v3) -> identity in eval mode.
    s0 = jax.nn.sigmoid(y0)
    s1 = jax.nn.sigmoid(y1)

    # v5 = GELU(v4), exact erf form (torch.nn.GELU default).
    inv_sqrt2 = jnp.float32(1.0 / math.sqrt(2.0))
    g0 = 0.5 * s0 * (1.0 + jax.lax.erf(s0 * inv_sqrt2))
    g1 = 0.5 * s1 * (1.0 + jax.lax.erf(s1 * inv_sqrt2))

    # Interleave the two channel slabs into the (S, 2) row-major layout:
    #   out[:, 2j] = g0[:, j],  out[:, 2j+1] = g1[:, j]
    # done as one-hot permutation matmuls on the idle MXU (VPU/EUP stay free
    # for the sigmoid/erf chain).  Single dense, lane-dense store.
    o_ref[0] = (
        jnp.dot(g0, p0_ref[...], preferred_element_type=jnp.float32)
        + jnp.dot(g1, p1_ref[...], preferred_element_type=jnp.float32)
    )


def _pick_rows(total_rows, cap=1024):
    """Largest multiple-of-8 divisor of total_rows up to `cap` (~1 MiB blocks)."""
    if total_rows <= cap:
        return total_rows               # block == full dim is always legal
    for r in range(cap, 7, -8):         # multiples of 8, descending
        if total_rows % r == 0:
            return r
    return total_rows                   # fallback: single tile along S


def model_forward(x, weight, bias):
    """x: (B, 2, S) f32; weight: (2, 2); bias: (2,). Returns (B, S, 2) f32."""
    B, C, S = x.shape
    assert C == 2 and weight.shape == (2, 2) and bias.shape == (2,)

    # Pad S to a multiple of 128 so every vector load/store is unmasked.
    s_pad = ((S + 127) // 128) * 128
    if s_pad != S:
        x = jnp.pad(x, ((0, 0), (0, 0), (0, s_pad - S)))

    total_rows = s_pad // 128
    rows = _pick_rows(total_rows)
    grid = (B, total_rows // rows)

    # Free metadata reshape of the contiguous channels-first input.
    x4 = x.reshape(B, 2, total_rows, 128)

    # One-hot lane-interleave matrices: channel c, lane j -> lane 2j + c.
    row_idx = jax.lax.broadcasted_iota(jnp.int32, (128, 256), 0)
    col_idx = jax.lax.broadcasted_iota(jnp.int32, (128, 256), 1)
    p0 = (col_idx == 2 * row_idx).astype(jnp.float32)
    p1 = (col_idx == 2 * row_idx + 1).astype(jnp.float32)

    out3 = pl.pallas_call(
        _fused_kernel,
        out_shape=jax.ShapeDtypeStruct((B, total_rows, 256), jnp.float32),
        grid=grid,
        in_specs=[
            pl.BlockSpec((1, 2, rows, 128), lambda b, s: (b, 0, s, 0)),
            pl.BlockSpec(memory_space=pltpu.MemorySpace.SMEM),   # weight (2,2)
            pl.BlockSpec(memory_space=pltpu.MemorySpace.SMEM),   # bias (2,)
            pl.BlockSpec((128, 256), lambda b, s: (0, 0)),       # P0 (constant)
            pl.BlockSpec((128, 256), lambda b, s: (0, 0)),       # P1 (constant)
        ],
        out_specs=pl.BlockSpec((1, rows, 256), lambda b, s: (b, s, 0)),
        compiler_params=pltpu.CompilerParams(
            dimension_semantics=("parallel", "parallel"),
            vmem_limit_bytes=32 * 1024 * 1024,
        ),
        cost_estimate=pl.CostEstimate(
            flops=1056 * B * s_pad,          # interleave matmuls + FMAs/GELU
            transcendentals=4 * B * s_pad,   # sigmoid + erf, 2 channels
            bytes_accessed=16 * B * s_pad,   # 8B read + 8B write per position
        ),
    )(x4, weight, bias, p0, p1)

    # Free contiguous reshape to the PyTorch (B, S, 2) layout; drop padding.
    out = out3.reshape(B, s_pad, 2)
    if s_pad != S:
        out = out[:, :S, :]
    return out


if __name__ == "__main__":
    key = jax.random.PRNGKey(0)
    kx, kw, kb = jax.random.split(key, 3)

    # Channels fixed at 2 by Linear(2, 2); S lane-dense but small so the demo
    # stays tiny (64 KiB input) while exercising the dense-tile path.
    B, C, S = 2, 2, 4096
    x = jax.random.normal(kx, (B, C, S), dtype=jnp.float32)

    # Deterministic params with torch.nn.Linear(2, 2)-style init bounds.
    bound = 1.0 / math.sqrt(C)
    weight = jax.random.uniform(kw, (2, 2), minval=-bound, maxval=bound,
                                dtype=jnp.float32)
    bias = jax.random.uniform(kb, (2,), minval=-bound, maxval=bound,
                              dtype=jnp.float32)

    out = model_forward(x, weight, bias)
    out = jax.block_until_ready(out)

    # Pure-JAX reference of the PyTorch forward (dropout = identity in eval).
    # TODO(synk): training-mode Dropout (p=0.5 stochastic mask) not implemented.
    v1 = jnp.transpose(x, (0, 2, 1))
    v2 = v1 @ weight.T + bias
    v3 = jax.nn.sigmoid(v2)
    v5 = 0.5 * v3 * (1.0 + jax.lax.erf(v3 / jnp.float32(math.sqrt(2.0))))

    assert out.shape == (B, S, 2)
    assert jnp.allclose(out, v5, atol=2e-5, rtol=2e-5)

    print("KERNEL_OK")
</pallas_src>

<mosaic_0001>
module attributes {stable_mosaic.version = 11 : i64} {
  func.func @_fused_kernel(%arg0: i32, %arg1: i32, %arg2: memref<1x2x32x128xf32, #tpu.memory_space<vmem>>, %arg3: memref<2x2xf32, #tpu.memory_space<smem>>, %arg4: memref<2xf32, #tpu.memory_space<smem>>, %arg5: memref<128x256xf32, #tpu.memory_space<vmem>>, %arg6: memref<128x256xf32, #tpu.memory_space<vmem>>, %arg7: memref<1x32x256xf32, #tpu.memory_space<vmem>>) attributes {dimension_semantics = [#tpu.dimension_semantics<parallel>, #tpu.dimension_semantics<parallel>], iteration_bounds = array<i64: 2, 1>, scalar_prefetch = 0 : i64, scratch_operands = 0 : i64, tpu.core_type = #tpu.core_type<tc>, window_params = [{transform_indices = @transform_0, window_bounds = array<i64: 1, 2, 32, 128>}, {transform_indices = @transform_1, window_bounds = array<i64: 2, 2>}, {transform_indices = @transform_2, window_bounds = array<i64: 2>}, {pipeline_mode = #tpu.pipeline_mode<synchronous>, transform_indices = @transform_3, window_bounds = array<i64: 128, 256>}, {pipeline_mode = #tpu.pipeline_mode<synchronous>, transform_indices = @transform_4, window_bounds = array<i64: 128, 256>}, {transform_indices = @transform_5, window_bounds = array<i64: 1, 32, 256>}]} {
    %c0 = arith.constant 0 : index
    %c0_0 = arith.constant 0 : index
    %c0_1 = arith.constant 0 : index
    %c0_2 = arith.constant 0 : index
    %0 = vector.load %arg2[%c0, %c0_0, %c0_1, %c0_2] : memref<1x2x32x128xf32, #tpu.memory_space<vmem>>, vector<1x1x32x128xf32>
    %1 = vector.shape_cast %0 : vector<1x1x32x128xf32> to vector<32x128xf32>
    %c0_3 = arith.constant 0 : index
    %c1 = arith.constant 1 : index
    %c0_4 = arith.constant 0 : index
    %c0_5 = arith.constant 0 : index
    %2 = vector.load %arg2[%c0_3, %c1, %c0_4, %c0_5] : memref<1x2x32x128xf32, #tpu.memory_space<vmem>>, vector<1x1x32x128xf32>
    %3 = vector.shape_cast %2 : vector<1x1x32x128xf32> to vector<32x128xf32>
    %c0_6 = arith.constant 0 : index
    %c0_7 = arith.constant 0 : index
    %4 = memref.load %arg3[%c0_6, %c0_7] : memref<2x2xf32, #tpu.memory_space<smem>>
    %c0_8 = arith.constant 0 : index
    %c1_9 = arith.constant 1 : index
    %5 = memref.load %arg3[%c0_8, %c1_9] : memref<2x2xf32, #tpu.memory_space<smem>>
    %c1_10 = arith.constant 1 : index
    %c0_11 = arith.constant 0 : index
    %6 = memref.load %arg3[%c1_10, %c0_11] : memref<2x2xf32, #tpu.memory_space<smem>>
    %c1_12 = arith.constant 1 : index
    %c1_13 = arith.constant 1 : index
    %7 = memref.load %arg3[%c1_12, %c1_13] : memref<2x2xf32, #tpu.memory_space<smem>>
    %c0_14 = arith.constant 0 : index
    %8 = memref.load %arg4[%c0_14] : memref<2xf32, #tpu.memory_space<smem>>
    %c1_15 = arith.constant 1 : index
    %9 = memref.load %arg4[%c1_15] : memref<2xf32, #tpu.memory_space<smem>>
    %10 = vector.broadcast %4 : f32 to vector<32x128xf32>
    %11 = arith.mulf %1, %10 : vector<32x128xf32>
    %12 = vector.broadcast %5 : f32 to vector<32x128xf32>
    %13 = arith.mulf %3, %12 : vector<32x128xf32>
    %14 = arith.addf %11, %13 : vector<32x128xf32>
    %15 = vector.broadcast %8 : f32 to vector<32x128xf32>
    %16 = arith.addf %14, %15 : vector<32x128xf32>
    %17 = vector.broadcast %6 : f32 to vector<32x128xf32>
    %18 = arith.mulf %1, %17 : vector<32x128xf32>
    %19 = vector.broadcast %7 : f32 to vector<32x128xf32>
    %20 = arith.mulf %3, %19 : vector<32x128xf32>
    %21 = arith.addf %18, %20 : vector<32x128xf32>
    %22 = vector.broadcast %9 : f32 to vector<32x128xf32>
    %23 = arith.addf %21, %22 : vector<32x128xf32>
    %24 = arith.negf %16 : vector<32x128xf32>
    %25 = math.exp %24 : vector<32x128xf32>
    %cst = arith.constant 1.000000e+00 : f32
    %26 = vector.broadcast %cst : f32 to vector<32x128xf32>
    %27 = arith.addf %26, %25 : vector<32x128xf32>
    %28 = arith.divf %26, %27 : vector<32x128xf32>
    %29 = arith.negf %23 : vector<32x128xf32>
    %30 = math.exp %29 : vector<32x128xf32>
    %cst_16 = arith.constant 1.000000e+00 : f32
    %31 = vector.broadcast %cst_16 : f32 to vector<32x128xf32>
    %32 = arith.addf %31, %30 : vector<32x128xf32>
    %33 = arith.divf %31, %32 : vector<32x128xf32>
    %cst_17 = arith.constant 5.000000e-01 : f32
    %34 = vector.broadcast %cst_17 : f32 to vector<32x128xf32>
    %35 = arith.mulf %34, %28 : vector<32x128xf32>
    %cst_18 = arith.constant 0.707106769 : f32
    %36 = vector.broadcast %cst_18 : f32 to vector<32x128xf32>
    %37 = arith.mulf %28, %36 : vector<32x128xf32>
    %38 = math.erf %37 : vector<32x128xf32>
    %cst_19 = arith.constant 1.000000e+00 : f32
    %39 = vector.broadcast %cst_19 : f32 to vector<32x128xf32>
    %40 = arith.addf %39, %38 : vector<32x128xf32>
    %41 = arith.mulf %35, %40 : vector<32x128xf32>
    %cst_20 = arith.constant 5.000000e-01 : f32
    %42 = vector.broadcast %cst_20 : f32 to vector<32x128xf32>
    %43 = arith.mulf %42, %33 : vector<32x128xf32>
    %cst_21 = arith.constant 0.707106769 : f32
    %44 = vector.broadcast %cst_21 : f32 to vector<32x128xf32>
    %45 = arith.mulf %33, %44 : vector<32x128xf32>
    %46 = math.erf %45 : vector<32x128xf32>
    %cst_22 = arith.constant 1.000000e+00 : f32
    %47 = vector.broadcast %cst_22 : f32 to vector<32x128xf32>
    %48 = arith.addf %47, %46 : vector<32x128xf32>
    %49 = arith.mulf %43, %48 : vector<32x128xf32>
    %c0_23 = arith.constant 0 : index
    %c0_24 = arith.constant 0 : index
    %50 = vector.load %arg5[%c0_23, %c0_24] : memref<128x256xf32, #tpu.memory_space<vmem>>, vector<128x256xf32>
    %cst_25 = arith.constant dense<0.000000e+00> : vector<32x256xf32>
    %51 = tpu.matmul %41, %50, %cst_25 {dimension_numbers = #tpu.dot_dimension_numbers<[1], [0], [0], [1], [0, 0, 1, 1], [], []>} : vector<32x128xf32>, vector<128x256xf32>, vector<32x256xf32> -> vector<32x256xf32>
    %c0_26 = arith.constant 0 : index
    %c0_27 = arith.constant 0 : index
    %52 = vector.load %arg6[%c0_26, %c0_27] : memref<128x256xf32, #tpu.memory_space<vmem>>, vector<128x256xf32>
    %cst_28 = arith.constant dense<0.000000e+00> : vector<32x256xf32>
    %53 = tpu.matmul %49, %52, %cst_28 {dimension_numbers = #tpu.dot_dimension_numbers<[1], [0], [0], [1], [0, 0, 1, 1], [], []>} : vector<32x128xf32>, vector<128x256xf32>, vector<32x256xf32> -> vector<32x256xf32>
    %54 = arith.addf %51, %53 : vector<32x256xf32>
    %c0_29 = arith.constant 0 : index
    %c0_30 = arith.constant 0 : index
    %c0_31 = arith.constant 0 : index
    %55 = vector.load %arg7[%c0_29, %c0_30, %c0_31] : memref<1x32x256xf32, #tpu.memory_space<vmem>>, vector<1x32x256xf32>
    %56 = vector.shape_cast %55 : vector<1x32x256xf32> to vector<32x256xf32>
    %57 = vector.shape_cast %54 : vector<32x256xf32> to vector<1x32x256xf32>
    tpu.vector_store %arg7[%c0_29, %c0_30, %c0_31], %57 {strides = array<i32>} : memref<1x32x256xf32, #tpu.memory_space<vmem>>, vector<1x32x256xf32>,
    return
  }
  func.func @transform_0(%arg0: i32, %arg1: i32) -> (i32, i32, i32, i32) {
    %c0_i32 = arith.constant 0 : i32
    %c0_i32_0 = arith.constant 0 : i32
    %c0_i32_1 = arith.constant 0 : i32
    return %arg0, %c0_i32, %arg1, %c0_i32_0 : i32, i32, i32, i32
  }
  func.func @transform_1(%arg0: i32, %arg1: i32) -> (i32, i32) {
    %c0_i32 = arith.constant 0 : i32
    %c0_i32_0 = arith.constant 0 : i32
    %c0_i32_1 = arith.constant 0 : i32
    return %c0_i32, %c0_i32_0 : i32, i32
  }
  func.func @transform_2(%arg0: i32, %arg1: i32) -> i32 {
    %c0_i32 = arith.constant 0 : i32
    %c0_i32_0 = arith.constant 0 : i32
    return %c0_i32 : i32
  }
  func.func @transform_3(%arg0: i32, %arg1: i32) -> (i32, i32) {
    %c0_i32 = arith.constant 0 : i32
    %c0_i32_0 = arith.constant 0 : i32
    %c0_i32_1 = arith.constant 0 : i32
    return %c0_i32, %c0_i32_0 : i32, i32
  }
  func.func @transform_4(%arg0: i32, %arg1: i32) -> (i32, i32) {
    %c0_i32 = arith.constant 0 : i32
    %c0_i32_0 = arith.constant 0 : i32
    %c0_i32_1 = arith.constant 0 : i32
    return %c0_i32, %c0_i32_0 : i32, i32
  }
  func.func @transform_5(%arg0: i32, %arg1: i32) -> (i32, i32, i32) {
    %c0_i32 = arith.constant 0 : i32
    %c0_i32_0 = arith.constant 0 : i32
    return %arg0, %arg1, %c0_i32 : i32, i32, i32
  }
}

</mosaic_0001>

<bundles_post_ra>
// kernel: tpu_custom_call.1
= control target key start
LH: loop header
LB: loop body
LE: loop exit
PB: predicated region body
PF: predicated region fallthrough
CT: control target
= control target key end

     0   :  { %10 = vsyncpa [#allocation3], 0  ;;  %s1763_s0 = inlined_call_operand.hbm [shape: f32[2,2,32,128], index: 0, kind: input, shape index: {}]   ;;  %s1764_s1 = inlined_call_operand.vmem [shape: f32[2,2], index: 1, kind: input, shape index: {}]   ;;  %s1765_s2 = inlined_call_operand.vmem [shape: f32[2], index: 2, kind: input, shape index: {}]   ;;  %s1766_s3 = inlined_call_operand.hbm [shape: f32[128,256], index: 3, kind: input, shape index: {}]   ;;  %s1767_s4 = inlined_call_operand.hbm [shape: f32[128,256], index: 4, kind: input, shape index: {}]   ;;  %s1768_s5 = inlined_call_operand.hbm [shape: f32[2,32,256], index: 5, kind: output, shape index: {}]  }
   0x1   :  { %12 = vsyncpa [#allocation3 + $0x1], 0 }
   0x2   :  { %13 = vsyncpa [#allocation5], 0 }
   0x3   :  { %14 = vsyncpa [#allocation8], 0 }
   0x4   :  { %15 = vsyncpa [#allocation10], 0 }
   0x5   :  { %16 = vsyncpa [#allocation4], 0 }
   0x6   :  { %18 = vsyncpa [#allocation4 + $0x1], 0  ;;  %s1381_s18 = smov 0   ;;  %s1383_s19 = smov 0  }
   0x7   :  { %s1385_s20 = smov 0   ;;  %s1387_s21 = smov 0  }
   0x8   :  { %s1389_s22 = smov 0   ;;  %s1391_s23 = smov 0  }
   0x9 LB: > { %s855_s24 = sadd.s32 4294967295, %s1336_s23   ;;  %s856_s25 = sadd.s32 4294967294, %s1336_s23   ;;  %s1336_s23 = sphi %s1391_s23, %s24_s23   ;;  %s1332_s22 = sphi %s1389_s22, %s1794_s22   ;;  %s1328_s21 = sphi %s1387_s21, %s1793_s21   ;;  %s1324_s20 = sphi %s1385_s20, %s1792_s20   ;;  %s1320_s19 = sphi %s1383_s19, %s1791_s19   ;;  %s1316_s18 = sphi %s1381_s18, %s1790_s18  }
   0xa   : > { %p58_p0 = scmp.ne.s32.totalorder %s1320_s19, %s1316_s18  ;;  %p1415_p1 = scmp.eq.s32.totalorder %s855_s24, 0 }
   0xb   : > { %p1419_p2 = scmp.eq.s32.totalorder %s855_s24, 1  ;;  %p174_p3 = scmp.eq.s32.totalorder %s856_s25, 1 }
   0xc   : > { %s1774_s26 = scalar_select %p1415_p1, 1, 0 }
   0xd   : > { %s1775_s27 = scalar_select %p1419_p2, 1, 0 }
   0xe   : > { %p1425_p4 = por %p1415_p1, %p58_p0  ;;  %p857_p5 = scmp.ge.s32.totalorder %s1336_s23, 1 }
   0xf   : > { %p1430_p6 = por %p174_p3, %p58_p0  ;;  %p181_p7 = scmp.lt.s32.totalorder %s1336_s23, 3 }
  0x10   : > { %s1776_s28 = scalar_select %p1425_p4, 1, 0 }
  0x11   : > { %s1777_s29 = scalar_select %p1430_p6, 1, 0 }
  0x12   : > { %p1435_p8 = pnand %p857_p5, %p181_p7  ;;  %s1338_s6 = smov [#allocation9]  }
  0x13   : > { %s215_s7 = sshll.u32 %s1338_s6, 4  ;;  %s194_s11 = sshll.u32 %s1764_s1, 4  ;;  %s216_s7 = int_to_ptr.vmem [resolvable:$true] %s215_s7  ;;  %s1451_s11 = int_to_ptr.vmem [resolvable:$true] %s194_s11 }
  0x14   : > { %s1778_s30 = scalar_select %p1435_p8, 1, 0 }
  0x15   : > { %p988_p9 = pneg %p1435_p8  ;;  %s1126_s14 = scalar_lea.hbm %s1766_s3, 4096 }
  0x16   : > { %p1127_p12 = scmp.ne.s32.totalorder %s1766_s3, %s1126_s14  ;;  %p1133_p5 = scmp.lt.u32.totalorder %s1126_s14, %s1766_s3 }
  0x17   : > { %p1444_p11 = pnand %p988_p9, %p1415_p1 }
  0x19   : > { %p1461_p13 = pneg %p1444_p11 }
  0x1b   : > { %p1129_p0 = pnand %p1461_p13, %p1127_p12 }
  0x1d   : > { %p1130_p3 = pneg %p1129_p0 }
  0x1f   : > { %p1135_p7 = pnand %p1133_p5, %p1130_p3 }
  0x21   : > { %1138 = shalt.err (!%p1135_p7)
}
  0x22   : > { %s1139_s6 = scalar_lea.vmem %s216_s7, 4096  ;;  %p1147_p1 = scmp.lt.s32.totalorder %s216_s7, %s216_s7 }
  0x23   : > { %p1140_p9 = scmp.ne.s32.totalorder %s216_s7, %s1139_s6  ;;  %p1148_p4 = scmp.lt.s32.totalorder %s1139_s6, %s1139_s6 }
  0x25   : > { %p1142_p10 = pnand %p1140_p9, %p1461_p13  ;;  %p1149_p8 = por %p1148_p4, %p1147_p1 }
  0x27   : > { %p1143_p6 = pneg %p1142_p10 }
  0x29   : > { %p1150_p2 = pnand %p1149_p8, %p1143_p6 }
  0x2b   : > { %1153 = shalt.err (!%p1150_p2)
}
  0x2c   : > { %s1773_s9 = smov 256   ;;  %s1340_s10 = smov 16  }
  0x2d   : > { %997 = dma.hbm_to_vmem [thread:$0]  (!%p1444_p11), %s1766_s3, 4096, %s216_s7, [#allocation10], %s1773_s9, %s1773_s9, %s1340_s10  }
  0x2e   : > { %s1154_s14 = scalar_lea.vmem %s1451_s11, 32  ;;  %p1162_p4 = scmp.lt.s32.totalorder %s1451_s11, %s1451_s11 }
  0x2f   : > { %p1155_p10 = scmp.ne.s32.totalorder %s1451_s11, %s1154_s14  ;;  %p1163_p6 = scmp.lt.s32.totalorder %s1154_s14, %s1154_s14 }
  0x31   : > { %p1157_p1 = pnand %p1155_p10, %p1461_p13  ;;  %p1164_p8 = por %p1163_p6, %p1162_p4 }
  0x33   : > { %p1158_p2 = pneg %p1157_p1 }
  0x35   : > { %p1165_p12 = pnand %p1164_p8, %p1158_p2 }
  0x37   : > { %1168 = shalt.err (!%p1165_p12)
}
  0x38   : > { %s1341_s15 = smov [#allocation6]   ;;  %s205_s7 = sshll.u32 %s1765_s2, 4  ;;  %s206_s7 = int_to_ptr.vmem [resolvable:$true] %s205_s7 }
  0x39   : > { %991 = dma.vmem_to_smem (!%p1444_p11), %s1451_s11, 32, %s1341_s15, [#allocation5]  }
  0x3a   : > { %s1169_s25 = scalar_lea.vmem %s206_s7, 16  ;;  %p1177_p7 = scmp.lt.s32.totalorder %s206_s7, %s206_s7 }
  0x3b   : > { %p1170_p0 = scmp.ne.s32.totalorder %s206_s7, %s1169_s25  ;;  %p1178_p9 = scmp.lt.s32.totalorder %s1169_s25, %s1169_s25 }
  0x3d   : > { %p1172_p3 = pnand %p1170_p0, %p1461_p13  ;;  %p1179_p10 = por %p1178_p9, %p1177_p7 }
  0x3f   : > { %p1173_p5 = pneg %p1172_p3 }
  0x41   : > { %p1180_p1 = pnand %p1179_p10, %p1173_p5 }
  0x43   : > { %1183 = shalt.err (!%p1180_p1)
}
  0x44   : > { %s1342_s6 = smov [#allocation7]   ;;  %s1343_s11 = smov [#allocation11]  }
  0x45   : > { %994 = dma.vmem_to_smem (!%p1444_p11), %s206_s7, 16, %s1342_s6, [#allocation8]  }
  0x46   : > { %s228_s12 = sshll.u32 %s1343_s11, 4  ;;  %s1184_s15 = scalar_lea.hbm %s1767_s4, 4096  ;;  %s229_s12 = int_to_ptr.vmem [resolvable:$true] %s228_s12 }
  0x47   : > { %p1185_p2 = scmp.ne.s32.totalorder %s1767_s4, %s1184_s15  ;;  %p1191_p8 = scmp.lt.u32.totalorder %s1184_s15, %s1767_s4 }
  0x49   : > { %p1187_p4 = pnand %p1185_p2, %p1461_p13 }
  0x4b   : > { %p1188_p6 = pneg %p1187_p4 }
  0x4d   : > { %p1193_p12 = pnand %p1191_p8, %p1188_p6 }
  0x4f   : > { %1196 = shalt.err (!%p1193_p12)
}
  0x50   : > { %s1197_s7 = scalar_lea.vmem %s229_s12, 4096  ;;  %p1205_p7 = scmp.lt.s32.totalorder %s229_s12, %s229_s12 }
  0x51   : > { %p1198_p0 = scmp.ne.s32.totalorder %s229_s12, %s1197_s7  ;;  %p1206_p9 = scmp.lt.s32.totalorder %s1197_s7, %s1197_s7 }
  0x53   : > { %p1200_p3 = pnand %p1198_p0, %p1461_p13  ;;  %p1207_p10 = por %p1206_p9, %p1205_p7 }
  0x55   : > { %p1201_p5 = pneg %p1200_p3 }
  0x57   : > { %p1208_p1 = pnand %p1207_p10, %p1201_p5 }
  0x59   : > { %1211 = shalt.err (!%p1208_p1)
}
  0x5a   : > { %s1781_s6 = smov 256   ;;  %s36_s17 = sadd.s32 1, %s1332_s22 }
  0x5b   : > { %1000 = dma.hbm_to_vmem [thread:$0]  (!%p1444_p11), %s1767_s4, 4096, %s229_s12, [#allocation10], %s1781_s6, %s1781_s6, %s1340_s10  }
  0x5c   : > { %s45_s8 = sadd.s32 1, %s1324_s20  ;;  %p38_p13 = scmp.ge.s32.totalorder %s36_s17, 2 }
  0x5d   : > { %p52_p2 = scmp.ne.s32.totalorder %s1324_s20, %s1320_s19  ;;  %p53_p4 = scmp.eq.s32.totalorder %s1336_s23, 0 }
  0x5e   : > { %p1013_p6 = scmp.lt.s32.totalorder %s1336_s23, 2  ;;  %s1796_s17 = smov (%p38_p13, %s36_s17), 0 }
  0x5f   : > { %p54_p8 = por %p53_p4, %p52_p2  ;;  %p1782_p12 = scmp.ne.s32.totalorder %s1775_s27, 0 }
  0x60   : > { %s40_s14 = ssub.s32 %s1332_s22, %s1796_s17  ;;  %s242_s15 = sand.u32 1, %s1324_s20  }
  0x61   : > { %p1527_p0 = por %p1782_p12, %p52_p2  ;;  %p43_p3 = scmp.eq.s32.totalorder %s40_s14, 0 }
  0x62   : > { %s863_s10 = sshll.u32 %s242_s15, 6  ;;  %s894_s12 = sshll.u32 %s1332_s22, 10 }
  0x63   : > { %s1536_s16 = scalar_select %p43_p3, %s1324_s20, %s45_s8  }
  0x64   : > { %s1541_s7 = scalar_lea.hbm %s1763_s0, %s894_s12  ;;  %s246_s27 = scalar_lea.vmem [#allocation2], %s863_s10 }
  0x65   : > { %s255_s6 = sshll.u32 %s246_s27, 4  ;;  %p1545_p11 = pnand %p1013_p6, %p54_p8  ;;  %s1549_s6 = int_to_ptr.vmem [resolvable:$true] %s255_s6 }
  0x66   : > { %s1551_s11 = scalar_lea.sflag [#allocation3], %s242_s15  ;;  %s1212_s8 = scalar_lea.hbm %s1541_s7, 1024 }
  0x67   : > { %p1213_p5 = scmp.ne.s32.totalorder %s1541_s7, %s1212_s8  ;;  %p1214_p7 = pneg %p1545_p11 }
  0x68   : > { %s1217_s12 = scalar_lea.hbm %s1763_s0, 2048  ;;  %p1218_p1 = scmp.lt.u32.totalorder %s1541_s7, %s1763_s0 }
  0x69   : > { %p1215_p9 = pnand %p1214_p7, %p1213_p5  ;;  %p1219_p13 = scmp.lt.u32.totalorder %s1217_s12, %s1212_s8 }
  0x6a   : > { %p1221_p4 = scmp.lt.u32.totalorder %s1212_s8, %s1541_s7 }
  0x6b   : > { %p1216_p10 = pneg %p1215_p9  ;;  %p1220_p2 = por %p1219_p13, %p1218_p1 }
  0x6d   : > { %p1222_p6 = por %p1221_p4, %p1220_p2 }
  0x6f   : > { %p1223_p8 = pnand %p1222_p6, %p1216_p10 }
  0x71   : > { %1226 = shalt.err (!%p1223_p8)
}
  0x72   : > { %s1227_s15 = scalar_lea.vmem %s1549_s6, 1024  ;;  %s1344_s27 = smov [#allocation2]  }
  0x73   : > { %p1228_p12 = scmp.ne.s32.totalorder %s1549_s6, %s1227_s15  ;;  %s1232_s14 = sshll.u32 %s1344_s27, 4  ;;  %s1233_s14 = int_to_ptr.vmem [resolvable:$false] %s1232_s14 }
  0x74   : > { %s1234_s10 = scalar_lea.vmem %s1233_s14, 2048  ;;  %p1235_p9 = scmp.lt.s32.totalorder %s1549_s6, %s1233_s14 }
  0x75   : > { %p1230_p3 = pnand %p1228_p12, %p1214_p7  ;;  %p1236_p1 = scmp.lt.s32.totalorder %s1234_s10, %s1227_s15 }
  0x77   : > { %p1231_p5 = pneg %p1230_p3  ;;  %p1237_p13 = por %p1236_p1, %p1235_p9 }
  0x79   : > { %p1238_p2 = pnand %p1237_p13, %p1231_p5 }
  0x7b   : > { %1241 = shalt.err (!%p1238_p2)
}
  0x7c   : > { %s1345_s8 = smov 128   ;;  %s1346_s12 = smov 8  }
  0x7d   : > { %1004 = dma.hbm_to_vmem [thread:$0]  (!%p1545_p11), %s1541_s7, 1024, %s1549_s6, %s1551_s11, %s1345_s8, %s1345_s8, %s1346_s12  }
  0x7e   : > { %p1785_p7 = scmp.ne.s32.totalorder %s1778_s30, 0 }
  0x7f   : > { %s1582_s24 = sand.u32 (!%p1785_p7), 1, %s1320_s19   ;;  %p1786_p10 = scmp.ne.s32.totalorder (!%p1785_p7), %s1776_s28, 0 }
  0x80   : > { %267 = sbr.rel (%p1785_p7) target bundleno = 460 (0x1cc), region = 40  ;;  %s867_s25 = sshll.u32 (!%p1785_p7), %s1582_s24, 6 }
  0x81   : > { %s270_s15 = scalar_lea.sflag (!%p1785_p7), [#allocation3], %s1582_s24  ;;  %s1588_s27 = scalar_lea.vmem (!%p1785_p7), [#allocation2], %s867_s25 }
  0x87   : > { %1295 = dma.done.wait (%p1786_p10), %s270_s15, 1024  }
  0x88   : > { %1297 = vsyncadd (%p1786_p10), %s270_s15, 4294966272  ;;  %p1787_p11 = scmp.ne.s32.totalorder %s1774_s26, 0 }
  0x8a   : > { %1299 = dma.done.wait (%p1787_p11), [#allocation5], 32  }
  0x8b   : > { %1301 = vsyncadd (%p1787_p11), [#allocation5], 4294967264 }
  0x8c   : > { %1303 = dma.done.wait (%p1787_p11), [#allocation8], 16  }
  0x8d   : > { %1305 = vsyncadd (%p1787_p11), [#allocation8], 4294967280 }
  0x8e   : > { %1307 = dma.done.wait (%p1787_p11), [#allocation10], 8192  }
  0x8f   : > { %1309 = vsyncadd (%p1787_p11), [#allocation10], 4294959104 }
  0x90   : > { %294 = sfence }
  0x91   : > { %v493_v0 = vld [vmem:[#allocation11 + $0x8] sm:$0xff]  ;;  %v495_v1 = vld [vmem:[#allocation11 + $0x18] sm:$0xff]  ;;  %v492_v5 = vld [vmem:[#allocation11] sm:$0xff]  ;;  %v1347_v7 = vmov 0.0   ;;  %s1608_s26 = sld [smem:[#allocation6 + $0x80]]  ;;  %s1610_s28 = sld [smem:[#allocation6 + $0x81]] }
  0x92   : > { %v461_v2 = vld [vmem:[#allocation9 + $0x8] sm:$0xff]  ;;  %v896_v3 = vpack.c.bf16 %v495_v1, %v493_v0  ;;  %v463_v4 = vld [vmem:[#allocation9 + $0x18] sm:$0xff]  ;;  %v494_v6 = vld [vmem:[#allocation11 + $0x10] sm:$0xff]  ;;  %588 = vmatprep.mubr.f32.mxu1 %v1347_v7  ;;  %677 = vmatprep.mubr.f32.mxu0 %v1347_v7  ;;  %s1612_s30 = sld [smem:[#allocation7 + $0x1]]  ;;  %s1614_s7 = sld [smem:[#allocation6]] }
  0x93   : > { %v928_v8 = vpack.c.bf16 %v463_v4, %v461_v2  ;;  %v898_v9 = vpack.c.bf16 %v494_v6, %v492_v5  ;;  %v460_v10 = vld [vmem:[#allocation9] sm:$0xff]  ;;  %v462_v11 = vld [vmem:[#allocation9 + $0x10] sm:$0xff]  ;;  %v497_v12 = vld [vmem:[#allocation11 + $0x28] sm:$0xff]  ;;  %s1616_s6 = sld [smem:[#allocation6 + $0x1]]  ;;  %s1618_s9 = sld [smem:[#allocation7]] }
  0x94   : > { %897 = vmatprep.subr.bf16.mxu1 %v896_v3  ;;  %v930_v13 = vpack.c.bf16 %v462_v11, %v460_v10  ;;  %v499_v14 = vld [vmem:[#allocation11 + $0x38] sm:$0xff]  ;;  %v465_v15 = vld [vmem:[#allocation9 + $0x28] sm:$0xff]  ;;  %v496_v19 = vld [vmem:[#allocation11 + $0x20] sm:$0xff]  ;;  %s316_s11 = scalar_lea.vmem [#allocation12], %s867_s25  ;;  %s895_s14 = sshll.u32 %s1328_s21, 10 }
  0x95   : > { %v467_v16 = vld [vmem:[#allocation9 + $0x38] sm:$0xff]  ;;  %929 = vmatprep.subr.bf16.mxu0 %v928_v8  ;;  %899 = vmatpush1.bf16.msra.mxu1 %v898_v9  ;;  %v900_v17 = vpack.c.bf16 %v499_v14, %v497_v12  ;;  %v498_v20 = vld [vmem:[#allocation11 + $0x30] sm:$0xff]  ;;  %v464_v21 = vld [vmem:[#allocation9 + $0x20] sm:$0xff]  ;;  %s727_s10 = sshll.u32 %s316_s11, 4  ;;  %s1712_s25 = scalar_lea.hbm %s1768_s5, %s895_s14  ;;  %s1714_s10 = int_to_ptr.vmem [resolvable:$true] %s727_s10 }
  0x96   : > { %v932_v18 = vpack.c.bf16 %v467_v16, %v465_v15  ;;  %931 = vmatpush1.bf16.msra.mxu0 %v930_v13  ;;  %v902_v22 = vpack.c.bf16 %v498_v20, %v496_v19  ;;  %v466_v23 = vld [vmem:[#allocation9 + $0x30] sm:$0xff]  ;;  %v501_v24 = vld [vmem:[#allocation11 + $0x48] sm:$0xff]  ;;  %v503_v25 = vld [vmem:[#allocation11 + $0x58] sm:$0xff]  ;;  %s711_s21 = scalar_lea.sflag [#allocation4], %s1582_s24  ;;  %s1242_s15 = scalar_lea.vmem %s1714_s10, 1024 }
  0x97   : > { %901 = vmatprep.subr.bf16.mxu1 %v900_v17  ;;  %v934_v26 = vpack.c.bf16 %v466_v23, %v464_v21  ;;  %v904_v27 = vpack.c.bf16 %v503_v25, %v501_v24  ;;  %v469_v28 = vld [vmem:[#allocation9 + $0x48] sm:$0xff]  ;;  %v471_v29 = vld [vmem:[#allocation9 + $0x58] sm:$0xff]  ;;  %v500_v30 = vld [vmem:[#allocation11 + $0x40] sm:$0xff]  ;;  %v353_v17 = vstv %s1608_s26  ;;  %p1243_p4 = scmp.ne.s32.totalorder %s1714_s10, %s1242_s15 }
  0x98   : > { %933 = vmatprep.subr.bf16.mxu0 %v932_v18  ;;  %v936_v31 = vpack.c.bf16 %v471_v29, %v469_v28  ;;  %v502_v32 = vld [vmem:[#allocation11 + $0x50] sm:$0xff]  ;;  %v468_v33 = vld [vmem:[#allocation9 + $0x40] sm:$0xff]  ;;  %v505_v36 = vld [vmem:[#allocation11 + $0x68] sm:$0xff]  ;;  %v358_v18 = vstv %s1610_s28  ;;  %v1641_v19 = vstv %s1612_s30  ;;  %v1650_v25 = vstv %s1614_s7 }
  0x99   : > { %v470_v34 = vld [vmem:[#allocation9 + $0x50] sm:$0xff]  ;;  %903 = vmatpush1.bf16.msra.mxu1 %v902_v22  ;;  %v906_v35 = vpack.c.bf16 %v502_v32, %v500_v30  ;;  %v507_v37 = vld [vmem:[#allocation11 + $0x78] sm:$0xff]  ;;  %v473_v38 = vld [vmem:[#allocation9 + $0x68] sm:$0xff]  ;;  %p1244_p6 = pnand %p1243_p4, %p1527_p0 }
  0x9a   : > { %935 = vmatpush1.bf16.msra.mxu0 %v934_v26  ;;  %905 = vmatprep.subr.bf16.mxu1 %v904_v27  ;;  %v938_v39 = vpack.c.bf16 %v470_v34, %v468_v33  ;;  %v908_v40 = vpack.c.bf16 %v507_v37, %v505_v36  ;;  %v475_v41 = vld [vmem:[#allocation9 + $0x78] sm:$0xff]  ;;  %v504_v42 = vld [vmem:[#allocation11 + $0x60] sm:$0xff]  ;;  %v506_v43 = vld [vmem:[#allocation11 + $0x70] sm:$0xff]  ;;  %v1653_v26 = vstv %s1616_s6 }
  0x9b   : > { %937 = vmatprep.subr.bf16.mxu0 %v936_v31  ;;  %v940_v44 = vpack.c.bf16 %v475_v41, %v473_v38  ;;  %v472_v45 = vld [vmem:[#allocation9 + $0x60] sm:$0xff]  ;;  %v474_v46 = vld [vmem:[#allocation9 + $0x70] sm:$0xff]  ;;  %v509_v47 = vld [vmem:[#allocation11 + $0x88] sm:$0xff]  ;;  %v910_v51 = vpack.c.bf16 %v506_v43, %v504_v42  ;;  %p1245_p8 = pneg %p1244_p6 }
  0x9c   : > { %v511_v48 = vld [vmem:[#allocation11 + $0x98] sm:$0xff]  ;;  %v477_v49 = vld [vmem:[#allocation9 + $0x88] sm:$0xff]  ;;  %v508_v52 = vld [vmem:[#allocation11 + $0x80] sm:$0xff]  ;;  %v942_v55 = vpack.c.bf16 %v474_v46, %v472_v45 }
  0x9d   : > { %v479_v50 = vld [vmem:[#allocation9 + $0x98] sm:$0xff]  ;;  %907 = vmatpush1.bf16.msra.mxu1 %v906_v35  ;;  %v510_v53 = vld [vmem:[#allocation11 + $0x90] sm:$0xff]  ;;  %v476_v54 = vld [vmem:[#allocation9 + $0x80] sm:$0xff]  ;;  %v912_v56 = vpack.c.bf16 %v511_v48, %v509_v47 }
  0x9e   : > { %939 = vmatpush1.bf16.msra.mxu0 %v938_v39  ;;  %909 = vmatprep.subr.bf16.mxu1 %v908_v40  ;;  %v478_v57 = vld [vmem:[#allocation9 + $0x90] sm:$0xff]  ;;  %v513_v58 = vld [vmem:[#allocation11 + $0xa8] sm:$0xff]  ;;  %v515_v59 = vld [vmem:[#allocation11 + $0xb8] sm:$0xff]  ;;  %v944_v60 = vpack.c.bf16 %v479_v50, %v477_v49  ;;  %v914_v3 = vpack.c.bf16 %v510_v53, %v508_v52  ;;  %v1675_v40 = vstv %s1618_s9 }
  0x9f   : > { %941 = vmatprep.subr.bf16.mxu0 %v940_v44  ;;  %v481_v61 = vld [vmem:[#allocation9 + $0xa8] sm:$0xff]  ;;  %v483_v62 = vld [vmem:[#allocation9 + $0xb8] sm:$0xff]  ;;  %v512_v63 = vld [vmem:[#allocation11 + $0xa0] sm:$0xff]  ;;  %v946_v8 = vpack.c.bf16 %v478_v57, %v476_v54  ;;  %v916_v9 = vpack.c.bf16 %v515_v59, %v513_v58 }
  0xa0   : > { %v514_v0 = vld [vmem:[#allocation11 + $0xb0] sm:$0xff]  ;;  %v1620_v1 = vld [vmem:[#allocation9 + $0xa0] sm:$0xff]  ;;  %v1624_v4 = vld [vmem:[#allocation11 + $0xc8] sm:$0xff]  ;;  %v948_v13 = vpack.c.bf16 %v483_v62, %v481_v61 }
  0xa1   : > { %v1622_v2 = vld [vmem:[#allocation9 + $0xb0] sm:$0xff]  ;;  %911 = vmatpush1.bf16.msra.mxu1 %v910_v51  ;;  %v519_v5 = vld [vmem:[#allocation11 + $0xd8] sm:$0xff]  ;;  %v1626_v6 = vld [vmem:[#allocation9 + $0xc8] sm:$0xff]  ;;  %v918_v20 = vpack.c.bf16 %v514_v0, %v512_v63 }
  0xa2   : > { %943 = vmatpush1.bf16.msra.mxu0 %v942_v55  ;;  %913 = vmatprep.subr.bf16.mxu1 %v912_v56  ;;  %v487_v10 = vld [vmem:[#allocation9 + $0xd8] sm:$0xff]  ;;  %v1628_v11 = vld [vmem:[#allocation11 + $0xc0] sm:$0xff]  ;;  %v1630_v12 = vld [vmem:[#allocation11 + $0xd0] sm:$0xff]  ;;  %v950_v21 = vpack.c.bf16 %v1622_v2, %v1620_v1  ;;  %v920_v27 = vpack.c.bf16 %v519_v5, %v1624_v4 }
  0xa3   : > { %945 = vmatprep.subr.bf16.mxu0 %v944_v60  ;;  %v1632_v14 = vld [vmem:[#allocation9 + $0xc0] sm:$0xff]  ;;  %v1634_v15 = vld [vmem:[#allocation9 + $0xd0] sm:$0xff]  ;;  %v1636_v16 = vld [vmem:[#allocation11 + $0xe8] sm:$0xff]  ;;  %v952_v28 = vpack.c.bf16 %v487_v10, %v1626_v6  ;;  %v922_v29 = vpack.c.bf16 %v1630_v12, %v1628_v11 }
  0xa4   : > { %v523_v22 = vld [vmem:[#allocation11 + $0xf8] sm:$0xff]  ;;  %v1645_v23 = vld [vmem:[#allocation9 + $0xe8] sm:$0xff]  ;;  %v954_v30 = vpack.c.bf16 %v1634_v15, %v1632_v14  ;;  %v1661_v31 = vld [vmem:[#allocation11 + $0xe0] sm:$0xff] }
  0xa5   : > { %v1647_v24 = vld [vmem:[#allocation9 + $0xf8] sm:$0xff]  ;;  %915 = vmatpush1.bf16.msra.mxu1 %v914_v3  ;;  %v1663_v32 = vld [vmem:[#allocation11 + $0xf0] sm:$0xff]  ;;  %v1665_v33 = vld [vmem:[#allocation9 + $0xe0] sm:$0xff]  ;;  %v924_v34 = vpack.c.bf16 %v523_v22, %v1636_v16 }
  0xa6   : > { %947 = vmatpush1.bf16.msra.mxu0 %v946_v8  ;;  %917 = vmatprep.subr.bf16.mxu1 %v916_v9  ;;  %v956_v35 = vpack.c.bf16 %v1647_v24, %v1645_v23  ;;  %v926_v36 = vpack.c.bf16 %v1663_v32, %v1661_v31  ;;  %v490_v37 = vld [vmem:[#allocation9 + $0xf0] sm:$0xff]  ;;  %v319_v38 = vld [vmem:[%s1588_s27] sm:$0xff]  ;;  %v320_v45 = vld [vmem:[%s1588_s27 + $0x8] sm:$0xff] }
  0xa7   : > { %v873_v39 = vld [vmem:[%s1588_s27 + $0x20] sm:$0xff]  ;;  %949 = vmatprep.subr.bf16.mxu0 %v948_v13  ;;  %v958_v41 = vpack.c.bf16 %v490_v37, %v1665_v33  ;;  %v354_v42 = vmul.f32 %v353_v17, %v319_v38  ;;  %v335_v44 = vmul.f32 %v1650_v25, %v319_v38  ;;  %v874_v46 = vld [vmem:[%s1588_s27 + $0x28] sm:$0xff]  ;;  %v321_v47 = vld [vmem:[%s1588_s27 + $0x10] sm:$0xff]  ;;  %v355_v49 = vmul.f32 %v353_v17, %v320_v45 }
  0xa8   : > { %v359_v43 = vmul.f32 %v873_v39, %v358_v18  ;;  %v340_v48 = vmul.f32 %v873_v39, %v1653_v26  ;;  %v360_v50 = vmul.f32 %v874_v46, %v358_v18  ;;  %v336_v51 = vmul.f32 %v1650_v25, %v320_v45  ;;  %v875_v52 = vld [vmem:[%s1588_s27 + $0x30] sm:$0xff]  ;;  %v322_v57 = vld [vmem:[%s1588_s27 + $0x18] sm:$0xff] }
  0xa9   : > { %919 = vmatpush1.bf16.msra.mxu1 %v918_v20  ;;  %v341_v54 = vmul.f32 %v874_v46, %v1653_v26  ;;  %v356_v55 = vmul.f32 %v353_v17, %v321_v47  ;;  %v361_v56 = vmul.f32 %v875_v52, %v358_v18  ;;  %v876_v58 = vld [vmem:[%s1588_s27 + $0x38] sm:$0xff]  ;;  %v337_v61 = vmul.f32 %v1650_v25, %v321_v47  ;;  %s1348_s27 = smov [#allocation12]  }
  0xaa   : > { %v363_v53 = vadd.f32 %v359_v43, %v354_v42  ;;  %951 = vmatpush1.bf16.msra.mxu0 %v950_v21  ;;  %921 = vmatprep.subr.bf16.mxu1 %v920_v27  ;;  %v344_v59 = vadd.f32 %v340_v48, %v335_v44  ;;  %v364_v60 = vadd.f32 %v360_v50, %v355_v49  ;;  %s1246_s26 = sshll.u32 %s1348_s27, 4  ;;  %s1247_s26 = int_to_ptr.vmem [resolvable:$false] %s1246_s26 }
  0xab   : > { %953 = vmatprep.subr.bf16.mxu0 %v952_v28  ;;  %v345_v63 = vadd.f32 %v341_v54, %v336_v51  ;;  %v365_v0 = vadd.f32 %v361_v56, %v356_v55  ;;  %v342_v1 = vmul.f32 %v875_v52, %v1653_v26  ;;  %v357_v4 = vmul.f32 %v353_v17, %v322_v57  ;;  %s1248_s28 = scalar_lea.vmem %s1247_s26, 2048  ;;  %p1249_p12 = scmp.lt.s32.totalorder %s1714_s10, %s1247_s26 }
  0xac   : > { %v368_v62 = vadd.f32 %v1641_v19, %v363_v53  ;;  %v349_v2 = vadd.f32 %v1675_v40, %v344_v59  ;;  %v369_v3 = vadd.f32 %v1641_v19, %v364_v60  ;;  %v362_v5 = vmul.f32 %v876_v58, %v358_v18  ;;  %p1250_p3 = scmp.lt.s32.totalorder %s1248_s28, %s1242_s15 }
  0xad   : > { %923 = vmatpush1.bf16.msra.mxu1 %v922_v29  ;;  %v350_v8 = vadd.f32 %v1675_v40, %v345_v63  ;;  %v370_v9 = vadd.f32 %v1641_v19, %v365_v0  ;;  %v346_v10 = vadd.f32 %v342_v1, %v337_v61  ;;  %v338_v14 = vmul.f32 %v1650_v25, %v322_v57 }
  0xae   : > { %v885_v6 = vmul.f32 -1.442695, %v368_v62  ;;  %955 = vmatpush1.bf16.msra.mxu0 %v954_v30  ;;  %925 = vmatprep.subr.bf16.mxu1 %v924_v34  ;;  %v881_v11 = vmul.f32 -1.442695, %v349_v2  ;;  %v886_v12 = vmul.f32 -1.442695, %v369_v3  ;;  %v366_v13 = vadd.f32 %v362_v5, %v357_v4  ;;  %p1251_p5 = por %p1250_p3, %p1249_p12 }
  0xaf   : > { %957 = vmatprep.subr.bf16.mxu0 %v956_v35  ;;  %v882_v15 = vmul.f32 -1.442695, %v350_v8  ;;  %v887_v16 = vmul.f32 -1.442695, %v370_v9  ;;  %v351_v17 = vadd.f32 %v1675_v40, %v346_v10  ;;  %v343_v20 = vmul.f32 %v876_v58, %v1653_v26 }
  0xb0   : > { %1078 = vpow2.f32 %v885_v6  ;;  %v371_v18 = vadd.f32 %v1641_v19, %v366_v13  ;;  %p1252_p9 = pnand %p1251_p5, %p1245_p8 }
  0xb1   : > { %1080 = vpow2.f32 %v881_v11  ;;  %927 = vmatpush1.bf16.msra.mxu1 %v926_v36  ;;  %v883_v21 = vmul.f32 -1.442695, %v351_v17  ;;  %v347_v23 = vadd.f32 %v343_v20, %v338_v14 }
  0xb2   : > { %1082 = vpow2.f32 %v886_v12  ;;  %959 = vmatpush1.bf16.msra.mxu0 %v958_v41  ;;  %v888_v22 = vmul.f32 -1.442695, %v371_v18 }
  0xb3   : > { %1084 = vpow2.f32 %v882_v15  ;;  %v352_v24 = vadd.f32 %v1675_v40, %v347_v23 }
  0xb4   : > { %1086 = vpow2.f32 %v887_v16 }
  0xb5   : > { %1088 = vpow2.f32 %v883_v21  ;;  %v884_v25 = vmul.f32 -1.442695, %v352_v24 }
  0xb6   : > { %1090 = vpow2.f32 %v888_v22 }
  0xb7   : > { %1092 = vpow2.f32 %v884_v25 }
  0xba   : > { %v1079_v27 = vpop.eup %1078 }
  0xbb   : > { %v1081_v28 = vpop.eup %1080  ;;  %v408_v29 = vadd.f32 1.0, %v1079_v27 }
  0xbc   : > { %v1083_v19 = vpop.eup %1082  ;;  %v384_v30 = vadd.f32 1.0, %v1081_v28 }
  0xbd   : > { %v1085_v26 = vpop.eup %1084  ;;  %1094 = vrcp.f32 %v408_v29  ;;  %v409_v31 = vadd.f32 1.0, %v1083_v19 }
  0xbe   : > { %v1087_v32 = vpop.eup %1086  ;;  %1096 = vrcp.f32 %v384_v30  ;;  %v385_v33 = vadd.f32 1.0, %v1085_v26 }
  0xbf   : > { %v1089_v34 = vpop.eup %1088  ;;  %1098 = vrcp.f32 %v409_v31  ;;  %v410_v35 = vadd.f32 1.0, %v1087_v32 }
  0xc0   : > { %v1091_v36 = vpop.eup %1090  ;;  %1100 = vrcp.f32 %v385_v33  ;;  %v386_v37 = vadd.f32 1.0, %v1089_v34 }
  0xc1   : > { %1102 = vrcp.f32 %v410_v35  ;;  %v411_v38 = vadd.f32 1.0, %v1091_v36  ;;  %v1093_v39 = vpop.eup %1092 }
  0xc2   : > { %1104 = vrcp.f32 %v386_v37  ;;  %v387_v40 = vadd.f32 1.0, %v1093_v39 }
  0xc3   : > { %1106 = vrcp.f32 %v411_v38 }
  0xc4   : > { %1108 = vrcp.f32 %v387_v40 }
  0xc7   : > { %v1095_v41 = vpop.eup %1094 }
  0xc8   : > { %v1097_v42 = vpop.eup %1096  ;;  %v444_v43 = vmul.f32 0.70710677, %v1095_v41  ;;  %v440_v57 = vmul.f32 0.5, %v1095_v41 }
  0xc9   : > { %v1099_v44 = vpop.eup %1098  ;;  %v424_v45 = vmul.f32 0.70710677, %v1097_v42  ;;  %v420_v59 = vmul.f32 0.5, %v1097_v42 }
  0xca   : > { %v1101_v46 = vpop.eup %1100  ;;  %1110 = verf.f32 %v444_v43  ;;  %v445_v47 = vmul.f32 0.70710677, %v1099_v44  ;;  %v441_v62 = vmul.f32 0.5, %v1099_v44 }
  0xcb   : > { %v1103_v48 = vpop.eup %1102  ;;  %1112 = verf.f32 %v424_v45  ;;  %v425_v49 = vmul.f32 0.70710677, %v1101_v46  ;;  %v421_v1 = vmul.f32 0.5, %v1101_v46 }
  0xcc   : > { %v1105_v50 = vpop.eup %1104  ;;  %1114 = verf.f32 %v445_v47  ;;  %v446_v51 = vmul.f32 0.70710677, %v1103_v48  ;;  %v442_v11 = vmul.f32 0.5, %v1103_v48 }
  0xcd   : > { %v1107_v52 = vpop.eup %1106  ;;  %1116 = verf.f32 %v425_v49  ;;  %v426_v53 = vmul.f32 0.70710677, %v1105_v50  ;;  %v422_v15 = vmul.f32 0.5, %v1105_v50 }
  0xce   : > { %1118 = verf.f32 %v446_v51  ;;  %v447_v54 = vmul.f32 0.70710677, %v1107_v52  ;;  %v1109_v55 = vpop.eup %1108  ;;  %v443_v20 = vmul.f32 0.5, %v1107_v52 }
  0xcf   : > { %1120 = verf.f32 %v426_v53  ;;  %v427_v56 = vmul.f32 0.70710677, %v1109_v55  ;;  %v423_v23 = vmul.f32 0.5, %v1109_v55 }
  0xd0   : > { %1122 = verf.f32 %v447_v54 }
  0xd1   : > { %1124 = verf.f32 %v427_v56 }
  0xd4   : > { %v1111_v58 = vpop.eup %1110 }
  0xd5   : > { %v1113_v60 = vpop.eup %1112  ;;  %v452_v61 = vadd.f32 1.0, %v1111_v58 }
  0xd6   : > { %v1115_v63 = vpop.eup %1114  ;;  %v432_v0 = vadd.f32 1.0, %v1113_v60 }
  0xd7   : > { %v1117_v2 = vpop.eup %1116  ;;  %v456_v3 = vmul.f32 %v452_v61, %v440_v57  ;;  %v453_v4 = vadd.f32 1.0, %v1115_v63 }
  0xd8   : > { %v1119_v5 = vpop.eup %1118  ;;  %v436_v6 = vmul.f32 %v432_v0, %v420_v59  ;;  %v433_v8 = vadd.f32 1.0, %v1117_v2 }
  0xd9   : > { %v1121_v9 = vpop.eup %1120  ;;  %589 = vmatmul.mubr.f32.vlgmr.msra.gmra.mrb[0].mxu1 %v456_v3  ;;  %v457_v10 = vmul.f32 %v453_v4, %v441_v62  ;;  %v454_v12 = vadd.f32 1.0, %v1119_v5 }
  0xda   : > { %v1123_v13 = vpop.eup %1122  ;;  %678 = vmatmul.mubr.f32.vlgmr.msra.gmra.mrb[0].mxu0 %v436_v6  ;;  %594 = vmatprep.mubr.f32.mxu1 %v1347_v7  ;;  %v437_v14 = vmul.f32 %v433_v8, %v421_v1  ;;  %v434_v16 = vadd.f32 1.0, %v1121_v9 }
  0xdb   : > { %683 = vmatprep.mubr.f32.mxu0 %v1347_v7  ;;  %v1125_v17 = vpop.eup %1124  ;;  %v458_v18 = vmul.f32 %v454_v12, %v442_v11  ;;  %v455_v21 = vadd.f32 1.0, %v1123_v13 }
  0xdc   : > { %v438_v22 = vmul.f32 %v434_v16, %v422_v15  ;;  %v435_v24 = vadd.f32 1.0, %v1125_v17 }
  0xdd   : > { %595 = vmatmul.mubr.f32.gmra.mrb[2].mxu1 %v457_v10  ;;  %v459_v25 = vmul.f32 %v455_v21, %v443_v20 }
  0xde   : > { %684 = vmatmul.mubr.f32.gmra.mrb[2].mxu0 %v437_v14  ;;  %600 = vmatprep.mubr.f32.mxu1 %v1347_v7  ;;  %v439_v27 = vmul.f32 %v435_v24, %v423_v23 }
  0xdf   : > { %689 = vmatprep.mubr.f32.mxu0 %v1347_v7 }
  0xe1   : > { %601 = vmatmul.mubr.f32.gmra.mrb[4].mxu1 %v458_v18 }
  0xe2   : > { %690 = vmatmul.mubr.f32.gmra.mrb[4].mxu0 %v438_v22  ;;  %606 = vmatprep.mubr.f32.mxu1 %v1347_v7 }
  0xe3   : > { %695 = vmatprep.mubr.f32.mxu0 %v1347_v7 }
  0xe5   : > { %607 = vmatmul.mubr.f32.gmra.mrb[6].mxu1 %v459_v25 }
  0xe6   : > { %696 = vmatmul.mubr.f32.gmra.mrb[6].mxu0 %v439_v27 }
 0x1ac   : > { %v590_v28 = vpop.f32.mrb[0].mxu1 }
 0x1ad   : > { %v679_v29 = vpop.f32.mrb[0].mxu0  ;;  %v592_v19 = vpop.f32.mrb[1].mxu1 }
 0x1ae   : > { %v680_v30 = vadd.f32 %v679_v29, %v590_v28  ;;  %v681_v26 = vpop.f32.mrb[1].mxu0 }
 0x1af   : > { %v682_v31 = vadd.f32 %v681_v26, %v592_v19 }
 0x1b0   : > { %702 = vst [vmem:[%s316_s11] sm:$0xff] %v680_v30  ;;  %v596_v32 = vpop.f32.mrb[2].mxu1 }
 0x1b1   : > { %703 = vst [vmem:[%s316_s11 + $0x8] sm:$0xff] %v682_v31  ;;  %v685_v33 = vpop.f32.mrb[2].mxu0  ;;  %v598_v34 = vpop.f32.mrb[3].mxu1 }
 0x1b2   : > { %v686_v35 = vadd.f32 %v685_v33, %v596_v32  ;;  %v687_v36 = vpop.f32.mrb[3].mxu0 }
 0x1b3   : > { %v688_v37 = vadd.f32 %v687_v36, %v598_v34 }
 0x1b4   : > { %704 = vst [vmem:[%s316_s11 + $0x10] sm:$0xff] %v686_v35  ;;  %v602_v7 = vpop.f32.mrb[4].mxu1 }
 0x1b5   : > { %705 = vst [vmem:[%s316_s11 + $0x18] sm:$0xff] %v688_v37  ;;  %v691_v38 = vpop.f32.mrb[4].mxu0  ;;  %v604_v39 = vpop.f32.mrb[5].mxu1 }
 0x1b6   : > { %v692_v40 = vadd.f32 %v691_v38, %v602_v7  ;;  %v693_v41 = vpop.f32.mrb[5].mxu0 }
 0x1b7   : > { %v694_v42 = vadd.f32 %v693_v41, %v604_v39 }
 0x1b8   : > { %706 = vst [vmem:[%s316_s11 + $0x20] sm:$0xff] %v692_v40  ;;  %v608_v43 = vpop.f32.mrb[6].mxu1 }
 0x1b9   : > { %707 = vst [vmem:[%s316_s11 + $0x28] sm:$0xff] %v694_v42  ;;  %v697_v44 = vpop.f32.mrb[6].mxu0  ;;  %v610_v45 = vpop.f32.mrb[7].mxu1 }
 0x1ba   : > { %v698_v46 = vadd.f32 %v697_v44, %v608_v43  ;;  %v699_v47 = vpop.f32.mrb[7].mxu0 }
 0x1bb   : > { %v700_v48 = vadd.f32 %v699_v47, %v610_v45 }
 0x1bc   : > { %708 = vst [vmem:[%s316_s11 + $0x30] sm:$0xff] %v698_v46 }
 0x1bd   : > { %709 = vst [vmem:[%s316_s11 + $0x38] sm:$0xff] %v700_v48 }
 0x1be   : > { %1255 = shalt.err (!%p1252_p9)
}
 0x1bf   : > { %s1256_s30 = scalar_lea.hbm %s1712_s25, 1024  ;;  %s1260_s9 = scalar_lea.hbm %s1768_s5, 2048 }
 0x1c0   : > { %p1257_p1 = scmp.ne.s32.totalorder %s1712_s25, %s1256_s30  ;;  %p1261_p7 = scmp.lt.u32.totalorder %s1712_s25, %s1768_s5 }
 0x1c1   : > { %p1262_p10 = scmp.lt.u32.totalorder %s1260_s9, %s1256_s30  ;;  %p1264_p4 = scmp.lt.u32.totalorder %s1256_s30, %s1712_s25 }
 0x1c2   : > { %p1258_p13 = pnand %p1257_p1, %p1527_p0 }
 0x1c3   : > { %p1263_p11 = por %p1262_p10, %p1261_p7 }
 0x1c4   : > { %p1259_p2 = pneg %p1258_p13 }
 0x1c5   : > { %p1265_p6 = por %p1264_p4, %p1263_p11 }
 0x1c7   : > { %p1266_p8 = pnand %p1265_p6, %p1259_p2 }
 0x1c9   : > { %1269 = shalt.err (!%p1266_p8)
}
 0x1ca   : > { %s1349_s8 = smov 256   ;;  %s1350_s12 = smov 16  }
 0x1cb   : > { %986 = dma.vmem_to_hbm [thread:$0]  (%p1527_p0), %s1714_s10, 1024, %s1712_s25, %s711_s21, %s1349_s8, %s1349_s8, %s1350_s12  }
 0x1cc PF: > { %s742_s15 = sand.u32 1, %s1316_s18   ;;  %p1788_p12 = scmp.ne.s32.totalorder %s1777_s29, 0 }
 0x1cd   : > { %p1789_p3 = scmp.ge.s32.totalorder %s1336_s23, 2  ;;  %s743_s27 = scalar_lea.sflag [#allocation4], %s742_s15 }
 0x1cf   : > { %p1006_p5 = pnand %p1789_p3, %p1788_p12 }
 0x1d1   : > { %1311 = dma.done.wait (!%p1006_p5), %s743_s27, 1024  }
 0x1d2   : > { %1313 = vsyncadd (!%p1006_p5), %s743_s27, 4294966272  ;;  %s24_s23 = sadd.s32 1, %s1336_s23   ;;  %s1790_s18 = smov %s1320_s19 }
 0x1d3   : > { %p21_p9 = scmp.ge.s32.totalorder %s24_s23, 4   ;;  %s1791_s19 = smov %s1324_s20 }
 0x1d4   : > { %s1792_s20 = smov %s1536_s16  ;;  %s1793_s21 = smov %s1332_s22 }
 0x1d5   : > { %s1794_s22 = smov %s1796_s17  ;;  %23 = sbr.rel (!%p21_p9) target bundleno = 9 (0x9), region = 103 }
 0x1dc   :  { %748 = vsyncpa [#allocation3], 1 }
 0x1dd   :  { %750 = vsyncpa [#allocation3 + $0x1], 1 }
 0x1de   :  { %751 = vsyncpa [#allocation10], 1 }
 0x1df   :  { %752 = vsyncpa [#allocation4], 1 }
 0x1e0   :  { %754 = vsyncpa [#allocation4 + $0x1], 1 }
 0x1e1   :  { %755 = vsyncpa [#allocation5], 1 }
 0x1e2   :  { %757 = vsyncpa [#allocation5 + $0x1], 1 }
 0x1e3   :  { %758 = vsyncpa [#allocation8], 1 }

</bundles_post_ra>
